<compile_context>
chip_gen: v7x
topology: tpu7x:2x2x1
jax: 0.10.0
libtpu: 0.0.40
codegen_flags: <defaults>
</compile_context>

<pallas_src>
import functools

import jax
import jax.numpy as jnp
from jax.experimental import pallas as pl
from jax.experimental.pallas import tpu as pltpu


def _round_up(x, m):
    return (x + m - 1) // m * m


def _function_kernel(label_ref, x_ref, w_ref, b_ref, logits_ref, loss_ref,
                     *, margin: float, target: bool, nlabels: int):
    # label_ref: (1,) i32 in SMEM (scalar prefetch)
    # x_ref: (TM, TK) bf16, w_ref: (TK, Lp) bf16, b_ref: (1, Lp) f32
    # logits_ref: (TM, Lp) f32 (doubles as the K-axis accumulator)
    # loss_ref: (TM, 128) f32
    k = pl.program_id(1)

    @pl.when(k == 0)
    def _init():
        logits_ref[...] = jnp.zeros_like(logits_ref)

    # MXU hot path: bf16 x bf16 -> f32 accumulate into the resident output tile.
    logits_ref[...] += jnp.dot(x_ref[...], w_ref[...],
                               preferred_element_type=jnp.float32)

    @pl.when(k == pl.num_programs(1) - 1)
    def _epilogue():
        logits = logits_ref[...] + b_ref[...]       # f32 epilogue
        logits_ref[...] = logits                    # lane-dense 128-wide store

        label = label_ref[0]
        col = jax.lax.broadcasted_iota(jnp.int32, logits.shape, dimension=1)
        is_label = col == label
        is_pad = col >= nlabels                     # exclude zero-padded classes

        other_max = jnp.max(
            jnp.where(is_label | is_pad, jnp.float32(-jnp.inf), logits),
            axis=1, keepdims=True)
        own = jnp.sum(jnp.where(is_label, logits, jnp.float32(0.0)),
                      axis=1, keepdims=True)

        if target:
            diff = other_max - own
        else:
            diff = own - other_max

        m = jnp.float32(margin)
        loss = jnp.maximum(diff + m, jnp.float32(0.0)) - m
        # lane-dense (TM, 128) store; wrapper slices column 0.
        loss_ref[...] = jnp.broadcast_to(loss, loss_ref.shape)


def function_forward(images, label, w, b, *, margin=0.0, target=False):
    """Equivalent of Function.forward(images, label) -> (logits, loss)."""
    if images.ndim == 3:                 # matches images.unsqueeze(0)
        images = images[None]
    n = images.shape[0]
    x = images.reshape(n, -1)            # (N, C*H*W), native dtype
    d = x.shape[1]
    nlabels = w.shape[1]
    assert w.shape == (d, nlabels)
    assert nlabels >= 2, "margin loss needs at least 2 classes"

    LANE = 128
    l_pad = _round_up(nlabels, LANE)

    # Batch tile: multiple of 16 sublanes (bf16 packing), capped at 256 rows.
    tm = 256 if n >= 256 else _round_up(n, 16)
    n_pad = _round_up(n, tm)

    # K tile on the flattened feature dim (bounded for v7x's 64 MiB VMEM).
    tk = min(2048, _round_up(d, 256))
    d_pad = _round_up(d, tk)

    # Zero-padded, bf16 input stream (halves HBM bytes; pads don't change the dot).
    x_p = jnp.zeros((n_pad, d_pad), dtype=jnp.bfloat16).at[:n, :d].set(
        x.astype(jnp.bfloat16))
    w_p = jnp.zeros((d_pad, l_pad), dtype=jnp.bfloat16).at[:d, :nlabels].set(
        w.astype(jnp.bfloat16))
    b_p = jnp.zeros((1, l_pad), dtype=jnp.float32).at[0, :nlabels].set(
        b.reshape(-1).astype(jnp.float32))

    label_arr = jnp.asarray([label], dtype=jnp.int32)

    kernel = functools.partial(_function_kernel, margin=float(margin),
                               target=bool(target), nlabels=int(nlabels))

    grid = (n_pad // tm, d_pad // tk)

    # VMEM budget: double-buffered bf16 x/W tiles + bias + f32 outputs.
    tile_bytes = (2 * tm * tk * 2           # x, 2 buffers, bf16
                  + 2 * tk * l_pad * 2      # W, 2 buffers, bf16
                  + 2 * l_pad * 4           # bias
                  + 2 * tm * l_pad * 4      # logits output (accumulator), 2 buffers
                  + 2 * tm * LANE * 4)      # loss output, 2 buffers
    vmem_limit = int(min(max(2 * tile_bytes, 32 << 20), 48 << 20))

    logits_p, loss_p = pl.pallas_call(
        kernel,
        out_shape=(
            jax.ShapeDtypeStruct((n_pad, l_pad), jnp.float32),
            jax.ShapeDtypeStruct((n_pad, LANE), jnp.float32),
        ),
        grid_spec=pltpu.PrefetchScalarGridSpec(
            num_scalar_prefetch=1,
            grid=grid,
            in_specs=[
                pl.BlockSpec((tm, tk), lambda i, k, lbl: (i, k)),      # x
                pl.BlockSpec((tk, l_pad), lambda i, k, lbl: (k, 0)),   # W
                pl.BlockSpec((1, l_pad), lambda i, k, lbl: (0, 0)),    # b
            ],
            out_specs=(
                pl.BlockSpec((tm, l_pad), lambda i, k, lbl: (i, 0)),   # logits
                pl.BlockSpec((tm, LANE), lambda i, k, lbl: (i, 0)),    # loss
            ),
        ),
        compiler_params=pltpu.CompilerParams(
            dimension_semantics=("parallel", "arbitrary"),
            vmem_limit_bytes=vmem_limit,
        ),
    )(label_arr, x_p, w_p, b_p)

    return logits_p[:n, :nlabels], loss_p[:n, 0]


def _reference(images, label, w, b, *, margin=0.0, target=False):
    # pure-JAX reference of the PyTorch semantics (inputs rounded to bf16 to
    # match the kernel's bf16 streaming; accumulation in f32).
    if images.ndim == 3:
        images = images[None]
    n = images.shape[0]
    x = images.reshape(n, -1).astype(jnp.bfloat16).astype(jnp.float32)
    wf = w.astype(jnp.bfloat16).astype(jnp.float32)
    logits = jnp.dot(x, wf, precision=jax.lax.Precision.HIGHEST) \
        + b.reshape(1, -1).astype(jnp.float32)
    mask = jnp.arange(logits.shape[1]) == label
    other_max = jnp.max(jnp.where(mask[None, :], -jnp.inf, logits), axis=1)
    own = logits[:, label]
    diff = (other_max - own) if target else (own - other_max)
    loss = jnp.maximum(diff + margin, 0.0) - margin
    return logits, loss


if __name__ == "__main__":
    # small, deterministic setup: batch=2, channels=4, spatial=16x16, nlabels=10
    key = jax.random.PRNGKey(0)
    k_img, k_w, k_b = jax.random.split(key, 3)

    N, C, H, W = 2, 4, 16, 16
    NLABELS = 10
    D = C * H * W

    images = jax.random.normal(k_img, (N, C, H, W), dtype=jnp.float32)   # NCHW
    w = jax.random.normal(k_w, (D, NLABELS), dtype=jnp.float32) * 0.05
    b = jax.random.normal(k_b, (NLABELS,), dtype=jnp.float32) * 0.05
    label = 3

    for tgt in (False, True):
        for mgn in (0.0, 0.5):
            logits, loss = function_forward(images, label, w, b,
                                            margin=mgn, target=tgt)
            logits, loss = jax.block_until_ready((logits, loss))

            ref_logits, ref_loss = _reference(images, label, w, b,
                                              margin=mgn, target=tgt)
            assert logits.shape == (N, NLABELS) and loss.shape == (N,)
            assert jnp.allclose(logits, ref_logits, atol=2e-2, rtol=2e-2), \
                f"logits mismatch (target={tgt}, margin={mgn})"
            assert jnp.allclose(loss, ref_loss, atol=2e-2, rtol=2e-2), \
                f"loss mismatch (target={tgt}, margin={mgn})"

    # TODO(synk): host-side bookkeeping (current_counts, new_counter,
    # update_counter, get_average) and the batch_size chunking loop are pure
    # Python/streaming state with no kernel equivalent; the batch grid axis
    # subsumes the chunking with identical results.
    print("KERNEL_OK")
</pallas_src>

<mosaic_0001>
module attributes {stable_mosaic.version = 11 : i64} {
  func.func @_function_kernel(%arg0: i32, %arg1: i32, %arg2: memref<1xi32, #tpu.memory_space<smem>>, %arg3: memref<16x1024xbf16, #tpu.memory_space<vmem>>, %arg4: memref<1024x128xbf16, #tpu.memory_space<vmem>>, %arg5: memref<1x128xf32, #tpu.memory_space<vmem>>, %arg6: memref<16x128xf32, #tpu.memory_space<vmem>>, %arg7: memref<16x128xf32, #tpu.memory_space<vmem>>) attributes {dimension_semantics = [#tpu.dimension_semantics<parallel>, #tpu.dimension_semantics<arbitrary>], iteration_bounds = array<i64: 1, 1>, scalar_prefetch = 1 : i64, scratch_operands = 0 : i64, tpu.core_type = #tpu.core_type<tc>, window_params = [{transform_indices = @transform_0, window_bounds = array<i64: 16, 1024>}, {transform_indices = @transform_1, window_bounds = array<i64: 1024, 128>}, {pipeline_mode = #tpu.pipeline_mode<synchronous>, transform_indices = @transform_2, window_bounds = array<i64: 1, 128>}, {transform_indices = @transform_3, window_bounds = array<i64: 16, 128>}, {transform_indices = @transform_4, window_bounds = array<i64: 16, 128>}]} {
    %c0_i32 = arith.constant 0 : i32
    %0 = arith.cmpi eq, %arg1, %c0_i32 : i32
    %1 = arith.extui %0 : i1 to i32
    %c0_i32_0 = arith.constant 0 : i32
    %2 = arith.cmpi ne, %1, %c0_i32_0 : i32
    scf.if %2 {
      %cst_10 = arith.constant 0.000000e+00 : f32
      %12 = vector.broadcast %cst_10 : f32 to vector<16x128xf32>
      %c0_11 = arith.constant 0 : index
      %c0_12 = arith.constant 0 : index
      %13 = vector.load %arg6[%c0_11, %c0_12] : memref<16x128xf32, #tpu.memory_space<vmem>>, vector<16x128xf32>
      tpu.vector_store %arg6[%c0_11, %c0_12], %12 {strides = array<i32>} : memref<16x128xf32, #tpu.memory_space<vmem>>, vector<16x128xf32>,
    } else {
    }
    %c0 = arith.constant 0 : index
    %c0_1 = arith.constant 0 : index
    %3 = vector.load %arg6[%c0, %c0_1] : memref<16x128xf32, #tpu.memory_space<vmem>>, vector<16x128xf32>
    %c0_2 = arith.constant 0 : index
    %c0_3 = arith.constant 0 : index
    %4 = vector.load %arg3[%c0_2, %c0_3] : memref<16x1024xbf16, #tpu.memory_space<vmem>>, vector<16x1024xbf16>
    %c0_4 = arith.constant 0 : index
    %c0_5 = arith.constant 0 : index
    %5 = vector.load %arg4[%c0_4, %c0_5] : memref<1024x128xbf16, #tpu.memory_space<vmem>>, vector<1024x128xbf16>
    %cst = arith.constant dense<0.000000e+00> : vector<16x128xf32>
    %6 = tpu.matmul %4, %5, %cst {dimension_numbers = #tpu.dot_dimension_numbers<[1], [0], [0], [1], [0, 0, 1, 1], [], []>} : vector<16x1024xbf16>, vector<1024x128xbf16>, vector<16x128xf32> -> vector<16x128xf32>
    %7 = arith.addf %3, %6 : vector<16x128xf32>
    %c0_6 = arith.constant 0 : index
    %c0_7 = arith.constant 0 : index
    %8 = vector.load %arg6[%c0_6, %c0_7] : memref<16x128xf32, #tpu.memory_space<vmem>>, vector<16x128xf32>
    tpu.vector_store %arg6[%c0_6, %c0_7], %7 {strides = array<i32>} : memref<16x128xf32, #tpu.memory_space<vmem>>, vector<16x128xf32>,
    %c0_i32_8 = arith.constant 0 : i32
    %9 = arith.cmpi eq, %arg1, %c0_i32_8 : i32
    %10 = arith.extui %9 : i1 to i32
    %c0_i32_9 = arith.constant 0 : i32
    %11 = arith.cmpi ne, %10, %c0_i32_9 : i32
    scf.if %11 {
      %c0_10 = arith.constant 0 : index
      %c0_11 = arith.constant 0 : index
      %12 = vector.load %arg6[%c0_10, %c0_11] : memref<16x128xf32, #tpu.memory_space<vmem>>, vector<16x128xf32>
      %c0_12 = arith.constant 0 : index
      %c0_13 = arith.constant 0 : index
      %13 = vector.load %arg5[%c0_12, %c0_13] : memref<1x128xf32, #tpu.memory_space<vmem>>, vector<1x128xf32>
      %14 = vector.broadcast %13 : vector<1x128xf32> to vector<16x128xf32>
      %15 = arith.addf %12, %14 : vector<16x128xf32>
      %c0_14 = arith.constant 0 : index
      %c0_15 = arith.constant 0 : index
      %16 = vector.load %arg6[%c0_14, %c0_15] : memref<16x128xf32, #tpu.memory_space<vmem>>, vector<16x128xf32>
      tpu.vector_store %arg6[%c0_14, %c0_15], %15 {strides = array<i32>} : memref<16x128xf32, #tpu.memory_space<vmem>>, vector<16x128xf32>,
      %c0_16 = arith.constant 0 : index
      %17 = memref.load %arg2[%c0_16] : memref<1xi32, #tpu.memory_space<smem>>
      %18 = tpu.iota {dimensions = array<i32: 1>} : vector<16x128xi32>
      %19 = vector.broadcast %17 : i32 to vector<16x128xi32>
      %20 = arith.cmpi eq, %18, %19 : vector<16x128xi32>
      %c10_i32 = arith.constant 10 : i32
      %21 = vector.broadcast %c10_i32 : i32 to vector<16x128xi32>
      %22 = arith.cmpi sge, %18, %21 : vector<16x128xi32>
      %23 = arith.ori %20, %22 : vector<16x128xi1>
      %cst_17 = arith.constant 0xFF800000 : f32
      %24 = vector.broadcast %cst_17 : f32 to vector<16x128xf32>
      %25 = arith.select %23, %24, %15 : vector<16x128xi1>, vector<16x128xf32>
      %cst_18 = arith.constant dense<0xFF800000> : vector<16xf32>
      %26 = vector.multi_reduction <maximumf>, %25, %cst_18 [1] : vector<16x128xf32> to vector<16xf32>
      %27 = vector.shape_cast %26 : vector<16xf32> to vector<16x1xf32>
      %cst_19 = arith.constant 0.000000e+00 : f32
      %28 = vector.broadcast %cst_19 : f32 to vector<16x128xf32>
      %29 = arith.select %20, %15, %28 : vector<16x128xi1>, vector<16x128xf32>
      %cst_20 = arith.constant dense<0.000000e+00> : vector<16xf32>
      %30 = vector.multi_reduction <add>, %29, %cst_20 [1] : vector<16x128xf32> to vector<16xf32>
      %31 = vector.shape_cast %30 : vector<16xf32> to vector<16x1xf32>
      %32 = arith.subf %31, %27 : vector<16x1xf32>
      %cst_21 = arith.constant 0.000000e+00 : f32
      %33 = vector.broadcast %cst_21 : f32 to vector<16x1xf32>
      %34 = arith.addf %32, %33 : vector<16x1xf32>
      %cst_22 = arith.constant 0.000000e+00 : f32
      %35 = vector.broadcast %cst_22 : f32 to vector<16x1xf32>
      %36 = arith.maximumf %34, %35 : vector<16x1xf32>
      %cst_23 = arith.constant 0.000000e+00 : f32
      %37 = vector.broadcast %cst_23 : f32 to vector<16x1xf32>
      %38 = arith.subf %36, %37 : vector<16x1xf32>
      %39 = vector.shape_cast %38 : vector<16x1xf32> to vector<16x1xf32>
      %40 = vector.broadcast %39 : vector<16x1xf32> to vector<16x128xf32>
      %c0_24 = arith.constant 0 : index
      %c0_25 = arith.constant 0 : index
      %41 = vector.load %arg7[%c0_24, %c0_25] : memref<16x128xf32, #tpu.memory_space<vmem>>, vector<16x128xf32>
      tpu.vector_store %arg7[%c0_24, %c0_25], %40 {strides = array<i32>} : memref<16x128xf32, #tpu.memory_space<vmem>>, vector<16x128xf32>,
    } else {
    }
    return
  }
  func.func @transform_0(%arg0: i32, %arg1: i32, %arg2: memref<1xi32, #tpu.memory_space<smem>>) -> (i32, i32) {
    %c0_i32 = arith.constant 0 : i32
    return %arg0, %arg1 : i32, i32
  }
  func.func @transform_1(%arg0: i32, %arg1: i32, %arg2: memref<1xi32, #tpu.memory_space<smem>>) -> (i32, i32) {
    %c0_i32 = arith.constant 0 : i32
    %c0_i32_0 = arith.constant 0 : i32
    return %arg1, %c0_i32 : i32, i32
  }
  func.func @transform_2(%arg0: i32, %arg1: i32, %arg2: memref<1xi32, #tpu.memory_space<smem>>) -> (i32, i32) {
    %c0_i32 = arith.constant 0 : i32
    %c0_i32_0 = arith.constant 0 : i32
    %c0_i32_1 = arith.constant 0 : i32
    return %c0_i32, %c0_i32_0 : i32, i32
  }
  func.func @transform_3(%arg0: i32, %arg1: i32, %arg2: memref<1xi32, #tpu.memory_space<smem>>) -> (i32, i32) {
    %c0_i32 = arith.constant 0 : i32
    %c0_i32_0 = arith.constant 0 : i32
    return %arg0, %c0_i32 : i32, i32
  }
  func.func @transform_4(%arg0: i32, %arg1: i32, %arg2: memref<1xi32, #tpu.memory_space<smem>>) -> (i32, i32) {
    %c0_i32 = arith.constant 0 : i32
    %c0_i32_0 = arith.constant 0 : i32
    return %arg0, %c0_i32 : i32, i32
  }
}

</mosaic_0001>

<bundles_post_ra>
// kernel: tpu_custom_call.1
= control target key start
LH: loop header
LB: loop body
LE: loop exit
PB: predicated region body
PF: predicated region fallthrough
CT: control target
= control target key end

     0   :  { %12 = vsyncpa [#allocation5], 0  ;;  %s1294_s0 = inlined_call_operand.<no memory space> [shape: s32[1], index: 0, kind: input, shape index: {}]   ;;  %s1295_s1 = inlined_call_operand.hbm [shape: bf16[16,1024], index: 1, kind: input, shape index: {}]   ;;  %s1296_s2 = inlined_call_operand.hbm [shape: bf16[1024,128], index: 2, kind: input, shape index: {}]   ;;  %s1297_s3 = inlined_call_operand.vmem [shape: f32[1,128], index: 3, kind: input, shape index: {}]   ;;  %s1298_s4 = inlined_call_operand.hbm [shape: f32[16,128], index: 4, kind: output, shape index: {0}]   ;;  %s1299_s5 = inlined_call_operand.hbm [shape: f32[16,128], index: 5, kind: output, shape index: {1}]  }
   0x1   :  { %13 = vsyncpa [#allocation8], 0 }
   0x2   :  { %14 = vsyncpa [#allocation6], 0 }
   0x3   :  { %15 = vsyncpa [#allocation11], 0  ;;  %s1194_s18 = smov [#allocation4]   ;;  %s1098_s22 = scalar_lea.hbm %s1295_s1, 1024 }
   0x4   :  { %s21_s19 = sshll.u32 %s1194_s18, 4  ;;  %p1099_p0 = scmp.ne.s32.totalorder %s1295_s1, %s1098_s22  ;;  %s22_s19 = int_to_ptr.vmem [resolvable:$true] %s21_s19 }
   0x5   :  { %p1102_p1 = scmp.lt.u32.totalorder %s1098_s22, %s1295_s1 }
   0x7   :  { %p1104_p2 = pnand %p1102_p1, %p1099_p0 }
   0x9   :  { %1107 = shalt.err (!%p1104_p2)
}
   0xa   :  { %s1108_s27 = scalar_lea.vmem %s22_s19, 1024  ;;  %p1113_p4 = scmp.lt.s32.totalorder %s22_s19, %s22_s19 }
   0xb   :  { %p1109_p3 = scmp.ne.s32.totalorder %s22_s19, %s1108_s27  ;;  %p1114_p5 = scmp.lt.s32.totalorder %s1108_s27, %s1108_s27 }
   0xd   :  { %p1115_p6 = por %p1114_p5, %p1113_p4 }
   0xf   :  { %p1116_p7 = pnand %p1115_p6, %p1109_p3 }
  0x11   :  { %1119 = shalt.err (!%p1116_p7)
}
  0x12   :  { %s1195_s28 = smov 512   ;;  %s1196_s29 = smov 32  }
  0x13   :  { %27 = dma.hbm_to_vmem [thread:$0]  %s1295_s1, 1024, %s22_s19, [#allocation5], %s1195_s28, %s1195_s28, %s1196_s29  }
  0x14   :  { %s1197_s7 = smov [#allocation7]   ;;  %s1120_s11 = scalar_lea.hbm %s1296_s2, 8192 }
  0x15   :  { %s33_s8 = sshll.u32 %s1197_s7, 4  ;;  %p1121_p8 = scmp.ne.s32.totalorder %s1296_s2, %s1120_s11  ;;  %s34_s8 = int_to_ptr.vmem [resolvable:$true] %s33_s8 }
  0x16   :  { %p1124_p9 = scmp.lt.u32.totalorder %s1120_s11, %s1296_s2 }
  0x18   :  { %p1126_p10 = pnand %p1124_p9, %p1121_p8 }
  0x1a   :  { %1129 = shalt.err (!%p1126_p10)
}
  0x1b   :  { %s1130_s16 = scalar_lea.vmem %s34_s8, 8192  ;;  %p1135_p12 = scmp.lt.s32.totalorder %s34_s8, %s34_s8 }
  0x1c   :  { %p1131_p11 = scmp.ne.s32.totalorder %s34_s8, %s1130_s16  ;;  %p1136_p13 = scmp.lt.s32.totalorder %s1130_s16, %s1130_s16 }
  0x1e   :  { %p1137_p0 = por %p1136_p13, %p1135_p12 }
  0x20   :  { %p1138_p1 = pnand %p1137_p0, %p1131_p11 }
  0x22   :  { %1141 = shalt.err (!%p1138_p1)
}
  0x23   :  { %s1198_s1 = smov 64   ;;  %s1199_s17 = smov 4  }
  0x24   :  { %39 = dma.hbm_to_vmem [thread:$0]  %s1296_s2, 8192, %s34_s8, [#allocation8], %s1198_s1, %s1198_s1, %s1199_s17  }
  0x25   :  { %1186 = dma.done.wait [#allocation5], 1024  }
  0x26   :  { %1187 = vsyncadd [#allocation5], 4294966272 }
  0x27   :  { %1188 = dma.done.wait [#allocation8], 8192  }
  0x28   :  { %1189 = vsyncadd [#allocation8], 4294959104  ;;  %v1034_v0 = vld [vmem:[#allocation7 + $0x40] sm:$0xff]   ;;  %v1038_v4 = vld [vmem:[#allocation7 + $0x48] sm:$0xff]  }
  0x29   :  { %v1035_v1 = vld [vmem:[#allocation7 + $0xc0] sm:$0xff]   ;;  %935 = vmatprep.subr.bf16.mxu0 %v1034_v0  ;;  %v1039_v5 = vld [vmem:[#allocation7 + $0xc8] sm:$0xff]   ;;  %v1042_v8 = vld [vmem:[#allocation7 + $0x50] sm:$0xff]  }
  0x2a   :  { %v1036_v2 = vld [vmem:[#allocation7] sm:$0xff]   ;;  %957 = vmatprep.subr.bf16.mxu1 %v1035_v1  ;;  %v1040_v6 = vld [vmem:[#allocation7 + $0x8] sm:$0xff]   ;;  %v1043_v9 = vld [vmem:[#allocation7 + $0xd0] sm:$0xff]  }
  0x2b   :  { %v1037_v3 = vld [vmem:[#allocation7 + $0x80] sm:$0xff]   ;;  %936 = vmatpush3.bf16.msra.mxu0 %v1036_v2  ;;  %v1041_v7 = vld [vmem:[#allocation7 + $0x88] sm:$0xff]   ;;  %v1044_v10 = vld [vmem:[#allocation7 + $0x10] sm:$0xff]  }
  0x2c   :  { %958 = vmatpush3.bf16.msra.mxu1 %v1037_v3  ;;  %937 = vmatprep.subr.bf16.mxu0 %v1038_v4  ;;  %v1045_v11 = vld [vmem:[#allocation7 + $0x90] sm:$0xff]   ;;  %v1046_v12 = vld [vmem:[#allocation7 + $0x58] sm:$0xff]   ;;  %v1050_v16 = vld [vmem:[#allocation7 + $0x60] sm:$0xff]  }
  0x2d   :  { %959 = vmatprep.subr.bf16.mxu1 %v1039_v5  ;;  %v1047_v13 = vld [vmem:[#allocation7 + $0xd8] sm:$0xff]   ;;  %v1051_v17 = vld [vmem:[#allocation7 + $0xe0] sm:$0xff]   ;;  %v1054_v20 = vld [vmem:[#allocation7 + $0x68] sm:$0xff]  }
  0x2e   :  { %v1048_v14 = vld [vmem:[#allocation7 + $0x18] sm:$0xff]   ;;  %v1052_v18 = vld [vmem:[#allocation7 + $0x20] sm:$0xff]   ;;  %v1055_v21 = vld [vmem:[#allocation7 + $0xe8] sm:$0xff]  }
  0x2f   :  { %938 = vmatpush3.bf16.msra.mxu0 %v1040_v6  ;;  %v1049_v15 = vld [vmem:[#allocation7 + $0x98] sm:$0xff]   ;;  %v1053_v19 = vld [vmem:[#allocation7 + $0xa0] sm:$0xff]   ;;  %v1056_v22 = vld [vmem:[#allocation7 + $0x28] sm:$0xff]  }
  0x30   :  { %960 = vmatpush3.bf16.msra.mxu1 %v1041_v7  ;;  %939 = vmatprep.subr.bf16.mxu0 %v1042_v8  ;;  %v1057_v23 = vld [vmem:[#allocation7 + $0xa8] sm:$0xff]   ;;  %v1058_v24 = vld [vmem:[#allocation7 + $0x70] sm:$0xff]   ;;  %v1062_v28 = vld [vmem:[#allocation7 + $0x78] sm:$0xff]  }
  0x31   :  { %961 = vmatprep.subr.bf16.mxu1 %v1043_v9  ;;  %v1059_v25 = vld [vmem:[#allocation7 + $0xf0] sm:$0xff]   ;;  %v1063_v29 = vld [vmem:[#allocation7 + $0xf8] sm:$0xff]   ;;  %v57_v32 = vld [vmem:[#allocation4] sm:$0xff] }
  0x32   :  { %v1060_v26 = vld [vmem:[#allocation7 + $0x30] sm:$0xff]   ;;  %v1064_v30 = vld [vmem:[#allocation7 + $0x38] sm:$0xff]   ;;  %v61_v33 = vld [vmem:[#allocation4 + $0x20] sm:$0xff] }
  0x33   :  { %940 = vmatpush3.bf16.msra.mxu0 %v1044_v10  ;;  %v1061_v27 = vld [vmem:[#allocation7 + $0xb0] sm:$0xff]   ;;  %v1065_v31 = vld [vmem:[#allocation7 + $0xb8] sm:$0xff]   ;;  %v58_v34 = vld [vmem:[#allocation4 + $0x8] sm:$0xff]  ;;  %v862_v35 = vcombine.low %v57_v32, %v61_v33  ;;  %v863_v36 = vcombine.high %v57_v32, %v61_v33 }
  0x34   :  { %962 = vmatpush3.bf16.msra.mxu1 %v1045_v11  ;;  %941 = vmatprep.subr.bf16.mxu0 %v1046_v12  ;;  %v62_v37 = vld [vmem:[#allocation4 + $0x28] sm:$0xff]  ;;  %v1066_v40 = vld [vmem:[#allocation7 + $0x140] sm:$0xff]   ;;  %v1074_v48 = vld [vmem:[#allocation7 + $0x150] sm:$0xff]  }
  0x35   :  { %963 = vmatprep.subr.bf16.mxu1 %v1047_v13  ;;  %v864_v38 = vcombine.low %v58_v34, %v62_v37  ;;  %v865_v39 = vcombine.high %v58_v34, %v62_v37  ;;  %649 = vmatprep.mubr.bf16.mxu0 %v863_v36  ;;  %v1067_v41 = vld [vmem:[#allocation7 + $0x1c0] sm:$0xff]   ;;  %v1070_v44 = vld [vmem:[#allocation7 + $0x148] sm:$0xff]   ;;  %v1075_v49 = vld [vmem:[#allocation7 + $0x1d0] sm:$0xff]  }
  0x36   :  { %v1068_v42 = vld [vmem:[#allocation7 + $0x100] sm:$0xff]   ;;  %v1071_v45 = vld [vmem:[#allocation7 + $0x1c8] sm:$0xff]   ;;  %v1076_v50 = vld [vmem:[#allocation7 + $0x110] sm:$0xff]  }
  0x37   :  { %942 = vmatpush3.bf16.msra.mxu0 %v1048_v14  ;;  %690 = vmatprep.mubr.bf16.mxu1 %v865_v39  ;;  %v1069_v43 = vld [vmem:[#allocation7 + $0x180] sm:$0xff]   ;;  %v1072_v46 = vld [vmem:[#allocation7 + $0x108] sm:$0xff]   ;;  %v1077_v51 = vld [vmem:[#allocation7 + $0x190] sm:$0xff]  }
  0x38   :  { %964 = vmatpush3.bf16.msra.mxu1 %v1049_v15  ;;  %943 = vmatprep.subr.bf16.mxu0 %v1050_v16  ;;  %v1073_v47 = vld [vmem:[#allocation7 + $0x188] sm:$0xff]   ;;  %v1078_v52 = vld [vmem:[#allocation7 + $0x158] sm:$0xff]   ;;  %v1082_v56 = vld [vmem:[#allocation7 + $0x160] sm:$0xff]  }
  0x39   :  { %965 = vmatprep.subr.bf16.mxu1 %v1051_v17  ;;  %v1079_v53 = vld [vmem:[#allocation7 + $0x1d8] sm:$0xff]   ;;  %v1083_v57 = vld [vmem:[#allocation7 + $0x1e0] sm:$0xff]   ;;  %v1086_v60 = vld [vmem:[#allocation7 + $0x168] sm:$0xff]  }
  0x3a   :  { %v1080_v54 = vld [vmem:[#allocation7 + $0x118] sm:$0xff]   ;;  %v1084_v58 = vld [vmem:[#allocation7 + $0x120] sm:$0xff]   ;;  %v1087_v61 = vld [vmem:[#allocation7 + $0x1e8] sm:$0xff]  }
  0x3b   :  { %944 = vmatpush3.bf16.msra.mxu0 %v1052_v18  ;;  %v1081_v55 = vld [vmem:[#allocation7 + $0x198] sm:$0xff]   ;;  %v1085_v59 = vld [vmem:[#allocation7 + $0x1a0] sm:$0xff]   ;;  %v1088_v62 = vld [vmem:[#allocation7 + $0x128] sm:$0xff]  }
  0x3c   :  { %966 = vmatpush3.bf16.msra.mxu1 %v1053_v19  ;;  %945 = vmatprep.subr.bf16.mxu0 %v1054_v20  ;;  %v1089_v63 = vld [vmem:[#allocation7 + $0x1a8] sm:$0xff]   ;;  %v1090_v0 = vld [vmem:[#allocation7 + $0x170] sm:$0xff]   ;;  %v1094_v4 = vld [vmem:[#allocation7 + $0x178] sm:$0xff]  }
  0x3d   :  { %967 = vmatprep.subr.bf16.mxu1 %v1055_v21  ;;  %v1091_v1 = vld [vmem:[#allocation7 + $0x1f0] sm:$0xff]   ;;  %v1095_v5 = vld [vmem:[#allocation7 + $0x1f8] sm:$0xff]  }
  0x3e   :  { %v1092_v2 = vld [vmem:[#allocation7 + $0x130] sm:$0xff]   ;;  %v1096_v6 = vld [vmem:[#allocation7 + $0x138] sm:$0xff]  }
  0x3f   :  { %946 = vmatpush3.bf16.msra.mxu0 %v1056_v22  ;;  %v1093_v3 = vld [vmem:[#allocation7 + $0x1b0] sm:$0xff]   ;;  %v1097_v7 = vld [vmem:[#allocation7 + $0x1b8] sm:$0xff]  }
  0x40   :  { %968 = vmatpush3.bf16.msra.mxu1 %v1057_v23  ;;  %947 = vmatprep.subr.bf16.mxu0 %v1058_v24  ;;  %v59_v8 = vld [vmem:[#allocation4 + $0x10] sm:$0xff]  ;;  %v60_v12 = vld [vmem:[#allocation4 + $0x18] sm:$0xff] }
  0x41   :  { %969 = vmatprep.subr.bf16.mxu1 %v1059_v25  ;;  %v63_v9 = vld [vmem:[#allocation4 + $0x30] sm:$0xff]  ;;  %v64_v13 = vld [vmem:[#allocation4 + $0x38] sm:$0xff] }
  0x42   :  { %v866_v10 = vcombine.low %v59_v8, %v63_v9  ;;  %v867_v11 = vcombine.high %v59_v8, %v63_v9  ;;  %v868_v14 = vcombine.low %v60_v12, %v64_v13  ;;  %v869_v15 = vcombine.high %v60_v12, %v64_v13 }
  0x43   :  { %948 = vmatpush3.bf16.msra.mxu0 %v1060_v26 }
  0x44   :  { %970 = vmatpush3.bf16.msra.mxu1 %v1061_v27  ;;  %949 = vmatprep.subr.bf16.mxu0 %v1062_v28 }
  0x45   :  { %971 = vmatprep.subr.bf16.mxu1 %v1063_v29 }
  0x47   :  { %950 = vmatpush3.bf16.msra.mxu0 %v1064_v30  ;;  %v802_v30 = vlaneseq }
  0x48   :  { %972 = vmatpush3.bf16.msra.mxu1 %v1065_v31  ;;  %979 = vmatprep.subr.bf16.mxu0 %v1066_v40 }
  0x49   :  { %1001 = vmatprep.subr.bf16.mxu1 %v1067_v41  ;;  %v803_v37 = vand.u32 127, %v802_v30  ;;  %v804_v41 = vstv %s1294_s0  ;;  %s1200_s0 = smov [#allocation9]  }
  0x4a   :  { %650 = vmatmul.mubr.bf16.vlgmr.msra.gmra.mrb[0].mxu0 %v862_v35  ;;  %s833_s23 = sshll.u32 %s1200_s0, 4  ;;  %s834_s23 = int_to_ptr.vmem [resolvable:$true] %s833_s23 }
  0x4b   :  { %691 = vmatmul.mubr.bf16.vlgmr.msra.gmra.mrb[0].mxu1 %v864_v38  ;;  %980 = vmatpush3.bf16.msra.mxu0 %v1068_v42  ;;  %vm805_vm0 = vcmp.eq.s32.totalorder %v803_v37, %v804_v41  ;;  %vm806_vm1 = vcmp.ge.s32.totalorder %v803_v37, 10  ;;  %s1142_s24 = scalar_lea.vmem %s834_s23, 256  ;;  %p1147_p3 = scmp.lt.s32.totalorder %s834_s23, %s834_s23 }
  0x4c   :  { %1002 = vmatpush3.bf16.msra.mxu1 %v1069_v43  ;;  %981 = vmatprep.subr.bf16.mxu0 %v1070_v44  ;;  %vm807_vm2 = vmor %vm805_vm0, %vm806_vm1  ;;  %p1143_p2 = scmp.ne.s32.totalorder %s834_s23, %s1142_s24  ;;  %p1148_p4 = scmp.lt.s32.totalorder %s1142_s24, %s1142_s24 }
  0x4d   :  { %1003 = vmatprep.subr.bf16.mxu1 %v1071_v45  ;;  %731 = vmatprep.mubr.bf16.mxu0 %v867_v11 }
  0x4e   :  { %772 = vmatprep.mubr.bf16.mxu1 %v869_v15  ;;  %p1149_p5 = por %p1148_p4, %p1147_p3 }
  0x4f   :  { %982 = vmatpush3.bf16.msra.mxu0 %v1072_v46 }
  0x50   :  { %1004 = vmatpush3.bf16.msra.mxu1 %v1073_v47  ;;  %983 = vmatprep.subr.bf16.mxu0 %v1074_v48  ;;  %v934_v48 = vld [vmem:[%s1297_s3] ss:$0 sm:$0xff]  ;;  %p1150_p6 = pnand %p1149_p5, %p1143_p2 }
  0x51   :  { %1005 = vmatprep.subr.bf16.mxu1 %v1075_v49 }
  0x53   :  { %984 = vmatpush3.bf16.msra.mxu0 %v1076_v50 }
  0x54   :  { %1006 = vmatpush3.bf16.msra.mxu1 %v1077_v51  ;;  %985 = vmatprep.subr.bf16.mxu0 %v1078_v52 }
  0x55   :  { %1007 = vmatprep.subr.bf16.mxu1 %v1079_v53 }
  0x57   :  { %986 = vmatpush3.bf16.msra.mxu0 %v1080_v54 }
  0x58   :  { %1008 = vmatpush3.bf16.msra.mxu1 %v1081_v55  ;;  %987 = vmatprep.subr.bf16.mxu0 %v1082_v56 }
  0x59   :  { %1009 = vmatprep.subr.bf16.mxu1 %v1083_v57 }
  0x5b   :  { %988 = vmatpush3.bf16.msra.mxu0 %v1084_v58 }
  0x5c   :  { %1010 = vmatpush3.bf16.msra.mxu1 %v1085_v59  ;;  %989 = vmatprep.subr.bf16.mxu0 %v1086_v60 }
  0x5d   :  { %1011 = vmatprep.subr.bf16.mxu1 %v1087_v61 }
  0x5f   :  { %990 = vmatpush3.bf16.msra.mxu0 %v1088_v62 }
  0x60   :  { %1012 = vmatpush3.bf16.msra.mxu1 %v1089_v63  ;;  %991 = vmatprep.subr.bf16.mxu0 %v1090_v0 }
  0x61   :  { %1013 = vmatprep.subr.bf16.mxu1 %v1091_v1 }
  0x63   :  { %992 = vmatpush3.bf16.msra.mxu0 %v1092_v2 }
  0x64   :  { %1014 = vmatpush3.bf16.msra.mxu1 %v1093_v3  ;;  %993 = vmatprep.subr.bf16.mxu0 %v1094_v4 }
  0x65   :  { %1015 = vmatprep.subr.bf16.mxu1 %v1095_v5 }
  0x67   :  { %994 = vmatpush3.bf16.msra.mxu0 %v1096_v6 }
  0x68   :  { %1016 = vmatpush3.bf16.msra.mxu1 %v1097_v7 }
  0x6a   :  { %732 = vmatmul.mubr.bf16.vlgmr.msra.gmra.mrb[4].mxu0 %v866_v10 }
  0x6b   :  { %773 = vmatmul.mubr.bf16.vlgmr.msra.gmra.mrb[4].mxu1 %v868_v14 }
 0x11d   :  { %v951_v16 = vpop.f32.mrb[0].mxu0 }
 0x11e   :  { %v973_v17 = vpop.f32.mrb[0].mxu1  ;;  %v952_v18 = vpop.f32.mrb[1].mxu0 }
 0x11f   :  { %v953_v19 = vadd.f32 %v952_v18, %v951_v16  ;;  %v974_v20 = vpop.f32.mrb[1].mxu1  ;;  %v954_v21 = vpop.f32.mrb[2].mxu0 }
 0x120   :  { %v975_v22 = vadd.f32 %v974_v20, %v973_v17  ;;  %v976_v23 = vpop.f32.mrb[2].mxu1  ;;  %v955_v24 = vpop.f32.mrb[3].mxu0 }
 0x121   :  { %v956_v25 = vadd.f32 %v955_v24, %v954_v21  ;;  %v977_v26 = vpop.f32.mrb[3].mxu1 }
 0x122   :  { %v693_v27 = vadd.f32 %v975_v22, %v953_v19  ;;  %v978_v28 = vadd.f32 %v977_v26, %v976_v23 }
 0x124   :  { %v696_v29 = vadd.f32 %v978_v28, %v956_v25 }
 0x13d   :  { %v995_v31 = vpop.f32.mrb[4].mxu0 }
 0x13e   :  { %v1017_v32 = vpop.f32.mrb[4].mxu1  ;;  %v996_v33 = vpop.f32.mrb[5].mxu0 }
 0x13f   :  { %v997_v34 = vadd.f32 %v996_v33, %v995_v31  ;;  %v1018_v35 = vpop.f32.mrb[5].mxu1  ;;  %v998_v36 = vpop.f32.mrb[6].mxu0 }
 0x140   :  { %v1019_v38 = vadd.f32 %v1018_v35, %v1017_v32  ;;  %v1020_v39 = vpop.f32.mrb[6].mxu1  ;;  %v999_v40 = vpop.f32.mrb[7].mxu0 }
 0x141   :  { %v734_v42 = vadd.f32 %v997_v34, %v693_v27  ;;  %v1000_v43 = vadd.f32 %v999_v40, %v998_v36  ;;  %v1021_v44 = vpop.f32.mrb[7].mxu1 }
 0x142   :  { %v1022_v45 = vadd.f32 %v1021_v44, %v1020_v39 }
 0x143   :  { %v775_v46 = vadd.f32 %v1019_v38, %v734_v42  ;;  %v737_v47 = vadd.f32 %v1000_v43, %v696_v29 }
 0x145   :  { %v778_v49 = vadd.f32 %v1022_v45, %v737_v47  ;;  %v797_v50 = vadd.f32 %v934_v48, %v775_v46 }
 0x147   :  { %v814_v51 = vsel %vm805_vm0, %v797_v50, 0.0  ;;  %799 = vst [vmem:[#allocation9] sm:$0xff] %v797_v50  ;;  %v808_v52 = vsel %vm807_vm2, -inf, %v797_v50  ;;  %v798_v53 = vadd.f32 %v934_v48, %v778_v49 }
 0x148   :  { %816 = vadd.xlane.f32.xlu1 %v814_v51  ;;  %810 = vmax.xlane.f32.xlu0 %v808_v52 }
 0x149   :  { %800 = vst [vmem:[#allocation9 + $0x8] sm:$0xff] %v798_v53  ;;  %v815_v54 = vsel %vm805_vm0, %v798_v53, 0.0  ;;  %v809_v55 = vsel %vm807_vm2, -inf, %v798_v53 }
 0x14c   :  { %818 = vadd.xlane.f32.xlu1 %v815_v54  ;;  %812 = vmax.xlane.f32.xlu0 %v809_v55 }
 0x14d   :  { %1153 = shalt.err (!%p1150_p6)
}
 0x14e   :  { %s1154_s26 = scalar_lea.hbm %s1298_s4, 256 }
 0x14f   :  { %p1155_p7 = scmp.ne.s32.totalorder %s1298_s4, %s1154_s26  ;;  %p1158_p8 = scmp.lt.u32.totalorder %s1154_s26, %s1298_s4 }
 0x151   :  { %p1160_p9 = pnand %p1158_p8, %p1155_p7 }
 0x153   :  { %1163 = shalt.err (!%p1160_p9)
}
 0x154   :  { %s1201_s6 = smov 128   ;;  %s1202_s7 = smov 8  }
 0x155   :  { %839 = dma.vmem_to_hbm [thread:$0]  %s834_s23, 256, %s1298_s4, [#allocation6], %s1201_s6, %s1201_s6, %s1202_s7  }
 0x156   :  { %s1203_s10 = smov [#allocation10]  }
 0x157   :  { %s845_s11 = sshll.u32 %s1203_s10, 4  ;;  %s846_s11 = int_to_ptr.vmem [resolvable:$true] %s845_s11 }
 0x158   :  { %s1164_s12 = scalar_lea.vmem %s846_s11, 256  ;;  %p1169_p11 = scmp.lt.s32.totalorder %s846_s11, %s846_s11 }
 0x159   :  { %p1165_p10 = scmp.ne.s32.totalorder %s846_s11, %s1164_s12  ;;  %p1170_p12 = scmp.lt.s32.totalorder %s1164_s12, %s1164_s12 }
 0x15b   :  { %p1171_p13 = por %p1170_p12, %p1169_p11 }
 0x15d   :  { %p1172_p0 = pnand %p1171_p13, %p1165_p10 }
 0x1d5   :  { %v817_v56 = vpop.xlane.xlu1 %816  ;;  %v811_v57 = vpop.xlane.xlu0 %810 }
 0x1d6   :  { %v820_v58 = vsub.f32 %v817_v56, %v811_v57 }
 0x1d8   :  { %v824_v59 = vmax.f32 %v820_v58, 0.0 }
 0x1d9   :  { %v819_v60 = vpop.xlane.xlu1 %818  ;;  %v813_v61 = vpop.xlane.xlu0 %812 }
 0x1da   :  { %826 = vst [vmem:[#allocation10] sm:$0xff] %v824_v59  ;;  %v821_v62 = vsub.f32 %v819_v60, %v813_v61 }
 0x1dc   :  { %v825_v63 = vmax.f32 %v821_v62, 0.0 }
 0x1de   :  { %827 = vst [vmem:[#allocation10 + $0x8] sm:$0xff] %v825_v63 }
 0x1df   :  { %1175 = shalt.err (!%p1172_p0)
}
 0x1e0   :  { %s1176_s14 = scalar_lea.hbm %s1299_s5, 256 }
 0x1e1   :  { %p1177_p1 = scmp.ne.s32.totalorder %s1299_s5, %s1176_s14  ;;  %p1180_p2 = scmp.lt.u32.totalorder %s1176_s14, %s1299_s5 }
 0x1e3   :  { %p1182_p3 = pnand %p1180_p2, %p1177_p1 }
 0x1e5   :  { %1185 = shalt.err (!%p1182_p3)
}
 0x1e6   :  { %851 = dma.vmem_to_hbm [thread:$0]  %s846_s11, 256, %s1299_s5, [#allocation11], %s1201_s6, %s1201_s6, %s1202_s7  }
 0x1e7   :  { %1190 = dma.done.wait [#allocation6], 256  }
 0x1e8   :  { %1191 = vsyncadd [#allocation6], 4294967040 }
 0x1e9   :  { %1192 = dma.done.wait [#allocation11], 256  }
 0x1ea   :  { %1193 = vsyncadd [#allocation11], 4294967040 }
 0x1eb   :  { %858 = vsyncpa [#allocation5], 1 }
 0x1ec   :  { %859 = vsyncpa [#allocation8], 1 }
 0x1ed   :  { %860 = vsyncpa [#allocation6], 1 }
 0x1ee   :  { %861 = vsyncpa [#allocation11], 1 }

</bundles_post_ra>
